<compile_context>
chip_gen: v7x
topology: tpu7x:2x2x1
jax: 0.10.0
libtpu: 0.0.40
codegen_flags: <defaults>
</compile_context>

<pallas_src>
import jax
import jax.numpy as jnp
from jax.experimental import pallas as pl
from jax.experimental.pallas import tpu as pltpu

_LANE = 128


def _round_up(x, m):
    return -(-x // m) * m


def _device_defaults():
    """Per-TPU-generation tile size, scoped-VMEM limit and physical budget."""
    kind = ""
    try:
        kind = jax.devices()[0].device_kind.lower()
    except Exception:  # pragma: no cover - defensive
        pass
    mib = 1024 * 1024
    if "v5" in kind:
        # 128 MiB VMEM, 1 TC, bandwidth-starved; tile_b multiple of 128.
        return dict(tile_b=512, vmem_limit=100 * mib, vmem_budget=128 * mib,
                    multi_tc=False)
    if "v6" in kind:
        # 128 MiB VMEM, 1 TC: fewest, largest steps; tile_b multiple of 256.
        return dict(tile_b=2048, vmem_limit=100 * mib, vmem_budget=128 * mib,
                    multi_tc=False)
    if "v7" in kind:
        # 64 MiB VMEM, 2 TCs: smaller tiles, keep >=2 grid steps for megacore.
        return dict(tile_b=1024, vmem_limit=48 * mib, vmem_budget=64 * mib,
                    multi_tc=True)
    # Unknown generation: assume the most constrained (v7x-like) budget.
    return dict(tile_b=512, vmem_limit=48 * mib, vmem_budget=64 * mib,
                multi_tc=True)


def _head_kernel(x_ref, w1_ref, b1_ref, w2_ref, b2_ref, o_ref):
    # x_ref:  (tile_b, H) CLS-token rows (sliced in the wrapper)
    # w1_ref: (H, H)   dense weight, (in, out) layout
    # b1_ref: (1, H)   dense bias (f32, pre-cast in wrapper)
    # w2_ref: (H, Lp)  out_proj weight, lane-padded to a multiple of 128
    # b2_ref: (1, Lp)  out_proj bias (f32, lane-padded, pre-cast)
    # o_ref:  (tile_b, Lp) lane-dense logits (caller slices off the padding)
    x = x_ref[...]

    # dense + tanh (dropout is identity at inference); native-dtype operands
    # feed the MXU, accumulation in f32, epilogue in f32.
    h = jnp.dot(x, w1_ref[...], preferred_element_type=jnp.float32)
    h = jnp.tanh(h + b1_ref[...])

    # out_proj; feed the MXU in the weight dtype (bf16 stays bf16, f32 no-op).
    out = jnp.dot(h.astype(w2_ref.dtype), w2_ref[...],
                  preferred_element_type=jnp.float32)
    o_ref[...] = (out + b2_ref[...]).astype(o_ref.dtype)


def _grid_call(x, w1, b1, w2, b2, *, tile_b, lp, out_dtype, vmem_limit,
               single_buffer_weights):
    """B-tiled path: only CLS rows stream; weights/biases stay VMEM-resident."""
    B, H = x.shape
    weight_mode = (pl.Buffered(buffer_count=1) if single_buffer_weights
                   else None)

    def resident(shape):
        # Constant block index -> operand stays resident across grid steps.
        if weight_mode is None:
            return pl.BlockSpec(shape, lambda i: (0, 0))
        return pl.BlockSpec(shape, lambda i: (0, 0), pipeline_mode=weight_mode)

    return pl.pallas_call(
        _head_kernel,
        out_shape=jax.ShapeDtypeStruct((B, lp), out_dtype),
        grid=(pl.cdiv(B, tile_b),),
        in_specs=[
            pl.BlockSpec((tile_b, H), lambda i: (i, 0)),   # CLS rows only
            resident((H, H)),                              # dense W
            resident((1, H)),                              # dense b
            resident((H, lp)),                             # out_proj W (padded)
            resident((1, lp)),                             # out_proj b (padded)
        ],
        out_specs=pl.BlockSpec((tile_b, lp), lambda i: (i, 0)),
        compiler_params=pltpu.CompilerParams(
            dimension_semantics=("parallel",),
            vmem_limit_bytes=vmem_limit,
        ),
    )(x, w1, b1, w2, b2)


def roberta_nonlinear_classification_head(features, w_dense, b_dense,
                                          w_out, b_out, *,
                                          tile_b=None, vmem_limit_bytes=None,
                                          matmul_dtype=None):
    """features: (B, S, H) or (B, H). Linear weights in (in, out) layout.

    matmul_dtype: optional dtype (e.g. jnp.bfloat16) to downcast x / weights
    before the matmuls (useful on bandwidth-starved v5e for f32 models);
    accumulation stays f32 and the output dtype matches `features`.
    """
    # CLS slice hoisted to the wrapper: only B*H elements ever reach the
    # kernel, never the full (B, S, H) tensor.
    x = features[:, 0, :] if features.ndim == 3 else features
    B, H = x.shape
    L = w_out.shape[1]
    out_dtype = features.dtype

    defaults = _device_defaults()
    if tile_b is None:
        tile_b = defaults["tile_b"]
    if vmem_limit_bytes is None:
        vmem_limit_bytes = defaults["vmem_limit"]
    vmem_budget = defaults["vmem_budget"]
    multi_tc = defaults["multi_tc"]

    # Lane-pad out_proj so the logits store is lane-dense (no vst.msk with
    # tiny num_labels) and the second matmul uses full MXU columns.
    lp = max(_LANE, _round_up(L, _LANE))
    w2 = jnp.pad(w_out, ((0, 0), (0, lp - L))) if lp != L else w_out
    b2 = jnp.pad(b_out, ((0, lp - L),)) if lp != L else b_out

    w1 = w_dense
    if matmul_dtype is not None:
        x = x.astype(matmul_dtype)
        w1 = w1.astype(matmul_dtype)
        w2 = w2.astype(matmul_dtype)

    # Hoisted bias prep: reshape + single f32 cast outside the kernel.
    b1 = b_dense.reshape(1, H).astype(jnp.float32)
    b2 = b2.reshape(1, lp).astype(jnp.float32)

    # ---- Dispatch: gridless only when everything comfortably fits in VMEM
    # and there is no megacore reason to split the batch. ----
    def _isz(a):
        return jnp.dtype(a.dtype).itemsize

    est_bytes = (B * H * _isz(x)                      # CLS features
                 + H * H * _isz(w1) + H * lp * _isz(w2)   # weights
                 + (H + lp) * 4                        # f32 biases
                 + B * lp * jnp.dtype(out_dtype).itemsize  # output
                 + B * (H + lp) * 4)                   # f32 intermediates slack
    use_gridless = (B <= tile_b
                    and est_bytes <= min(vmem_limit_bytes, vmem_budget) // 2)
    if multi_tc and B >= 512:
        # Enough rows to feed both TensorCores: force >= 2 "parallel" steps.
        use_gridless = False
        tile_b = min(tile_b, _round_up(-(-B // 2), 256))

    if use_gridless:
        # Gridless path: no pipeline prologue/epilogue, no double buffering;
        # all (already CLS-sliced, lane-padded) operands live whole in VMEM.
        out = pl.pallas_call(
            _head_kernel,
            out_shape=jax.ShapeDtypeStruct((B, lp), out_dtype),
            in_specs=[pl.BlockSpec(memory_space=pltpu.MemorySpace.VMEM)] * 5,
            out_specs=pl.BlockSpec(memory_space=pltpu.MemorySpace.VMEM),
            compiler_params=pltpu.CompilerParams(
                vmem_limit_bytes=vmem_limit_bytes),
        )(x, w1, b1, w2, b2)
    else:
        tile_b = max(8, min(tile_b, _round_up(B, 8)))
        try:
            # Constant-index weights/biases only need a single VMEM buffer.
            out = _grid_call(x, w1, b1, w2, b2, tile_b=tile_b, lp=lp,
                             out_dtype=out_dtype, vmem_limit=vmem_limit_bytes,
                             single_buffer_weights=True)
        except Exception:
            # pipeline_mode=pl.Buffered(1) not supported on this jax/TPU
            # combo -> fall back to default (double-buffered) residents.
            out = _grid_call(x, w1, b1, w2, b2, tile_b=tile_b, lp=lp,
                             out_dtype=out_dtype, vmem_limit=vmem_limit_bytes,
                             single_buffer_weights=False)

    return out[:, :L] if lp != L else out


if __name__ == "__main__":
    # Config-implied small shapes: hidden_size=32, num_labels=4, batch=2, seq=8.
    B, S, H, L = 2, 8, 32, 4

    key = jax.random.PRNGKey(0)
    k_feat, k_w1, k_b1, k_w2, k_b2, k_big, k_rag = jax.random.split(key, 7)

    features = jax.random.normal(k_feat, (B, S, H), dtype=jnp.float32)
    # Deterministic synthetic parameters (nn.Linear-like scale), (in, out) layout.
    w_dense = jax.random.normal(k_w1, (H, H), dtype=jnp.float32) * (1.0 / H ** 0.5)
    b_dense = jax.random.normal(k_b1, (H,), dtype=jnp.float32) * 0.01
    w_out = jax.random.normal(k_w2, (H, L), dtype=jnp.float32) * (1.0 / H ** 0.5)
    b_out = jax.random.normal(k_b2, (L,), dtype=jnp.float32) * 0.01

    def reference(feats, w1, b1, w2, b2):
        x = feats[:, 0, :] if feats.ndim == 3 else feats
        x = x.astype(jnp.float32)
        h = jnp.tanh(x @ w1.astype(jnp.float32) + b1.astype(jnp.float32))
        return h @ w2.astype(jnp.float32) + b2.astype(jnp.float32)

    ref = reference(features, w_dense, b_dense, w_out, b_out)

    # 1) Small batch, 3-D features -> gridless path (CLS sliced in wrapper).
    logits = jax.block_until_ready(
        roberta_nonlinear_classification_head(
            features, w_dense, b_dense, w_out, b_out))
    assert logits.shape == (B, L)
    assert jnp.allclose(logits, ref, atol=1e-5, rtol=1e-5)

    # 2) 2-D features (already-pooled CLS) -> same kernel.
    logits2d = jax.block_until_ready(
        roberta_nonlinear_classification_head(
            features[:, 0, :], w_dense, b_dense, w_out, b_out))
    assert jnp.allclose(logits2d, ref, atol=1e-5, rtol=1e-5)

    # 3) Larger batch with an explicit small tile -> B-tiled grid path
    #    (CLS-row-only DMA, VMEM-resident weights, lane-padded output).
    BIG_B = 256
    big_feats = jax.random.normal(k_big, (BIG_B, S, H), dtype=jnp.float32)
    big_logits = jax.block_until_ready(
        roberta_nonlinear_classification_head(
            big_feats, w_dense, b_dense, w_out, b_out, tile_b=128))
    big_ref = reference(big_feats, w_dense, b_dense, w_out, b_out)
    assert big_logits.shape == (BIG_B, L)
    assert jnp.allclose(big_logits, big_ref, atol=1e-5, rtol=1e-5)

    # 4) Ragged last batch tile on the grid path.
    RAG_B = 200
    rag_feats = jax.random.normal(k_rag, (RAG_B, S, H), dtype=jnp.float32)
    rag_logits = jax.block_until_ready(
        roberta_nonlinear_classification_head(
            rag_feats, w_dense, b_dense, w_out, b_out, tile_b=128))
    rag_ref = reference(rag_feats, w_dense, b_dense, w_out, b_out)
    assert rag_logits.shape == (RAG_B, L)
    assert jnp.allclose(rag_logits, rag_ref, atol=1e-5, rtol=1e-5)

    # 5) bf16 operands go straight to the MXU (no forced f32 up-cast).
    bf16 = jnp.bfloat16
    logits_bf16 = jax.block_until_ready(
        roberta_nonlinear_classification_head(
            features.astype(bf16), w_dense.astype(bf16), b_dense.astype(bf16),
            w_out.astype(bf16), b_out.astype(bf16)))
    assert logits_bf16.dtype == bf16
    assert jnp.allclose(logits_bf16.astype(jnp.float32), ref,
                        atol=1e-1, rtol=1e-1)

    # 6) Optional bf16 matmul downcast for f32 models (v5e bandwidth lever).
    logits_mixed = jax.block_until_ready(
        roberta_nonlinear_classification_head(
            features, w_dense, b_dense, w_out, b_out,
            matmul_dtype=jnp.bfloat16))
    assert logits_mixed.dtype == jnp.float32
    assert jnp.allclose(logits_mixed, ref, atol=1e-1, rtol=1e-1)

    # TODO(synk): dropout is modeled in eval mode (identity); training-mode
    # stochastic dropout would need pltpu.prng_* inside the kernel.

    print("KERNEL_OK")
</pallas_src>

<mosaic_0001>
module attributes {stable_mosaic.version = 11 : i64} {
  func.func @_head_kernel(%arg0: memref<2x32xf32, #tpu.memory_space<vmem>>, %arg1: memref<32x32xf32, #tpu.memory_space<vmem>>, %arg2: memref<1x32xf32, #tpu.memory_space<vmem>>, %arg3: memref<32x128xf32, #tpu.memory_space<vmem>>, %arg4: memref<1x128xf32, #tpu.memory_space<vmem>>, %arg5: memref<2x128xf32, #tpu.memory_space<vmem>>) attributes {dimension_semantics = [], scalar_prefetch = 0 : i64, scratch_operands = 0 : i64, tpu.core_type = #tpu.core_type<tc>} {
    %c0 = arith.constant 0 : index
    %c0_0 = arith.constant 0 : index
    %0 = vector.load %arg0[%c0, %c0_0] : memref<2x32xf32, #tpu.memory_space<vmem>>, vector<2x32xf32>
    %c0_1 = arith.constant 0 : index
    %c0_2 = arith.constant 0 : index
    %1 = vector.load %arg1[%c0_1, %c0_2] : memref<32x32xf32, #tpu.memory_space<vmem>>, vector<32x32xf32>
    %cst = arith.constant dense<0.000000e+00> : vector<2x32xf32>
    %2 = tpu.matmul %0, %1, %cst {dimension_numbers = #tpu.dot_dimension_numbers<[1], [0], [0], [1], [0, 0, 1, 1], [], []>} : vector<2x32xf32>, vector<32x32xf32>, vector<2x32xf32> -> vector<2x32xf32>
    %c0_3 = arith.constant 0 : index
    %c0_4 = arith.constant 0 : index
    %3 = vector.load %arg2[%c0_3, %c0_4] : memref<1x32xf32, #tpu.memory_space<vmem>>, vector<1x32xf32>
    %4 = vector.broadcast %3 : vector<1x32xf32> to vector<2x32xf32>
    %5 = arith.addf %2, %4 : vector<2x32xf32>
    %6 = math.tanh %5 : vector<2x32xf32>
    %c0_5 = arith.constant 0 : index
    %c0_6 = arith.constant 0 : index
    %7 = vector.load %arg3[%c0_5, %c0_6] : memref<32x128xf32, #tpu.memory_space<vmem>>, vector<32x128xf32>
    %cst_7 = arith.constant dense<0.000000e+00> : vector<2x128xf32>
    %8 = tpu.matmul %6, %7, %cst_7 {dimension_numbers = #tpu.dot_dimension_numbers<[1], [0], [0], [1], [0, 0, 1, 1], [], []>} : vector<2x32xf32>, vector<32x128xf32>, vector<2x128xf32> -> vector<2x128xf32>
    %c0_8 = arith.constant 0 : index
    %c0_9 = arith.constant 0 : index
    %9 = vector.load %arg4[%c0_8, %c0_9] : memref<1x128xf32, #tpu.memory_space<vmem>>, vector<1x128xf32>
    %10 = vector.broadcast %9 : vector<1x128xf32> to vector<2x128xf32>
    %11 = arith.addf %8, %10 : vector<2x128xf32>
    %c0_10 = arith.constant 0 : index
    %c0_11 = arith.constant 0 : index
    %12 = vector.load %arg5[%c0_10, %c0_11] : memref<2x128xf32, #tpu.memory_space<vmem>>, vector<2x128xf32>
    tpu.vector_store %arg5[%c0_10, %c0_11], %11 {strides = array<i32>} : memref<2x128xf32, #tpu.memory_space<vmem>>, vector<2x128xf32>,
    return
  }
}

</mosaic_0001>

<bundles_post_ra>
// kernel: tpu_custom_call.1
= control target key start
LH: loop header
LB: loop body
LE: loop exit
PB: predicated region body
PF: predicated region fallthrough
CT: control target
= control target key end

     0   :  { %10 = vsyncpa [#allocation3], 0  ;;  %s502_s0 = inlined_call_operand.hbm [shape: f32[2,32], index: 0, kind: input, shape index: {}]   ;;  %s503_s1 = inlined_call_operand.hbm [shape: f32[32,32], index: 1, kind: input, shape index: {}]   ;;  %s504_s2 = inlined_call_operand.vmem [shape: f32[1,32], index: 2, kind: input, shape index: {}]   ;;  %s505_s3 = inlined_call_operand.hbm [shape: f32[32,128], index: 3, kind: input, shape index: {}]   ;;  %s506_s4 = inlined_call_operand.vmem [shape: f32[1,128], index: 4, kind: input, shape index: {}]   ;;  %s507_s5 = inlined_call_operand.hbm [shape: f32[2,128], index: 5, kind: output, shape index: {}]  }
   0x1   :  { %11 = vsyncpa [#allocation6], 0 }
   0x2   :  { %12 = vsyncpa [#allocation4], 0  ;;  %s401_s18 = smov [#allocation5]   ;;  %s307_s22 = scalar_lea.hbm %s503_s1, 512 }
   0x3   :  { %s28_s19 = sshll.u32 %s401_s18, 4  ;;  %p308_p0 = scmp.ne.s32.totalorder %s503_s1, %s307_s22  ;;  %s29_s19 = int_to_ptr.vmem [resolvable:$true] %s28_s19 }
   0x4   :  { %p311_p1 = scmp.lt.u32.totalorder %s307_s22, %s503_s1 }
   0x6   :  { %p313_p2 = pnand %p311_p1, %p308_p0 }
   0x8   :  { %316 = shalt.err (!%p313_p2)
}
   0x9   :  { %s317_s27 = scalar_lea.vmem %s29_s19, 512  ;;  %p322_p4 = scmp.lt.s32.totalorder %s29_s19, %s29_s19 }
   0xa   :  { %p318_p3 = scmp.ne.s32.totalorder %s29_s19, %s317_s27  ;;  %p323_p5 = scmp.lt.s32.totalorder %s317_s27, %s317_s27 }
   0xc   :  { %p324_p6 = por %p323_p5, %p322_p4 }
   0xe   :  { %p325_p7 = pnand %p324_p6, %p318_p3 }
  0x10   :  { %328 = shalt.err (!%p325_p7)
}
  0x11   :  { %s402_s28 = smov 128   ;;  %s403_s29 = smov 8  }
  0x12   :  { %34 = dma.hbm_to_vmem [thread:$0]  %s503_s1, 512, %s29_s19, [#allocation6], %s402_s28, %s402_s28, %s403_s29  }
  0x13   :  { %s404_s7 = smov [#allocation2]   ;;  %s405_s9 = smov [#allocation7]  }
  0x14   :  { %s19_s8 = sshll.u32 %s404_s7, 4  ;;  %s42_s10 = sshll.u32 %s405_s9, 4  ;;  %s20_s8 = int_to_ptr.vmem [resolvable:$true] %s19_s8  ;;  %s43_s10 = int_to_ptr.vmem [resolvable:$true] %s42_s10 }
  0x15   :  { %s329_s13 = scalar_lea.hbm %s502_s0, 32 }
  0x16   :  { %p330_p8 = scmp.ne.s32.totalorder %s502_s0, %s329_s13  ;;  %p333_p9 = scmp.lt.u32.totalorder %s329_s13, %s502_s0 }
  0x18   :  { %p335_p10 = pnand %p333_p9, %p330_p8 }
  0x1a   :  { %338 = shalt.err (!%p335_p10)
}
  0x1b   :  { %s339_s1 = scalar_lea.vmem %s20_s8, 32  ;;  %p344_p12 = scmp.lt.s32.totalorder %s20_s8, %s20_s8 }
  0x1c   :  { %p340_p11 = scmp.ne.s32.totalorder %s20_s8, %s339_s1  ;;  %p345_p13 = scmp.lt.s32.totalorder %s339_s1, %s339_s1 }
  0x1e   :  { %p346_p0 = por %p345_p13, %p344_p12 }
  0x20   :  { %p347_p1 = pnand %p346_p0, %p340_p11 }
  0x22   :  { %350 = shalt.err (!%p347_p1)
}
  0x23   :  { %22 = dma.hbm_to_vmem [thread:$0]  %s502_s0, 32, %s20_s8, [#allocation3]  }
  0x24   :  { %s351_s22 = scalar_lea.hbm %s505_s3, 512 }
  0x25   :  { %p352_p2 = scmp.ne.s32.totalorder %s505_s3, %s351_s22  ;;  %p355_p3 = scmp.lt.u32.totalorder %s351_s22, %s505_s3 }
  0x27   :  { %p357_p4 = pnand %p355_p3, %p352_p2 }
  0x29   :  { %360 = shalt.err (!%p357_p4)
}
  0x2a   :  { %s361_s27 = scalar_lea.vmem %s43_s10, 512  ;;  %p366_p6 = scmp.lt.s32.totalorder %s43_s10, %s43_s10 }
  0x2b   :  { %p362_p5 = scmp.ne.s32.totalorder %s43_s10, %s361_s27  ;;  %p367_p7 = scmp.lt.s32.totalorder %s361_s27, %s361_s27 }
  0x2d   :  { %p368_p8 = por %p367_p7, %p366_p6 }
  0x2f   :  { %p369_p9 = pnand %p368_p8, %p362_p5 }
  0x31   :  { %372 = shalt.err (!%p369_p9)
}
  0x32   :  { %48 = dma.hbm_to_vmem [thread:$0]  %s505_s3, 512, %s43_s10, [#allocation6], %s402_s28, %s402_s28, %s403_s29  }
  0x33   :  { %395 = dma.done.wait [#allocation3], 32  }
  0x34   :  { %396 = vsyncadd [#allocation3], 4294967264 }
  0x35   :  { %397 = dma.done.wait [#allocation6], 1024  }
  0x36   :  { %398 = vsyncadd [#allocation6], 4294966272  ;;  %v406_v0 = vmov 0.0|0.0   ;;  %vm407_vm0 = vmmov 0   ;;  %v408_v1 = vmov 0.0   ;;  %v61_v2 = vld [vmem:[#allocation5] sm:$0xff] }
  0x37   :  { %284 = vmatprep.subr.bf16.mxu0 %v406_v0  ;;  %270 = vmatprep.mubr.msk.f32.mxu0 %vm407_vm0, %v408_v1  ;;  %v62_v3 = vld [vmem:[#allocation5 + $0x8] sm:$0xff]  ;;  %v63_v4 = vld [vmem:[#allocation5 + $0x10] sm:$0xff]  ;;  %v64_v6 = vld [vmem:[#allocation5 + $0x18] sm:$0xff]  ;;  %vm72_vm1 = vcmask 261120   ;;  %s409_s7 = smov [#allocation8]  }
  0x38   :  { %290 = vmatprep.subr.bf16.mxu1 %v406_v0  ;;  %281 = vmatprep.mubr.msk.f32.mxu1 %vm407_vm0, %v408_v1  ;;  %v285_v5 = vpack.c.bf16 %v62_v3, %v61_v2  ;;  %v288_v7 = vpack.c.bf16 %v64_v6, %v63_v4  ;;  %v60_v8 = vld [vmem:[#allocation2] sm:$0x3]  ;;  %v147_v9 = vld [vmem:[#allocation7] sm:$0xff]  ;;  %v148_v10 = vld [vmem:[#allocation7 + $0x8] sm:$0xff]  ;;  %s238_s8 = sshll.u32 %s409_s7, 4  ;;  %s239_s8 = int_to_ptr.vmem [resolvable:$true] %s238_s8 }
  0x39   :  { %v149_v11 = vld [vmem:[#allocation7 + $0x10] sm:$0xff]  ;;  %v291_v12 = vpack.c.bf16 %v148_v10, %v147_v9  ;;  %v150_v13 = vld [vmem:[#allocation7 + $0x18] sm:$0xff]  ;;  %s373_s9 = scalar_lea.vmem %s239_s8, 32  ;;  %p378_p11 = scmp.lt.s32.totalorder %s239_s8, %s239_s8 }
  0x3a   :  { %286 = vmatpush3.bf16.msra.mxu0 %v285_v5  ;;  %v294_v14 = vpack.c.bf16 %v150_v13, %v149_v11  ;;  %v248_v15 = vld [vmem:[%s504_s2] ss:$0 sm:$0xff]  ;;  %p374_p10 = scmp.ne.s32.totalorder %s239_s8, %s373_s9  ;;  %p379_p12 = scmp.lt.s32.totalorder %s373_s9, %s373_s9 }
  0x3b   :  { %287 = vmatprep.subr.bf16.mxu0 %v406_v0  ;;  %292 = vmatpush3.bf16.msra.mxu1 %v291_v12  ;;  %v250_v20 = vld [vmem:[%s506_s4] ss:$0 sm:$0xff] }
  0x3c   :  { %293 = vmatprep.subr.bf16.mxu1 %v406_v0  ;;  %p380_p13 = por %p379_p12, %p378_p11 }
  0x3e   :  { %289 = vmatpush3.bf16.msra.mxu0 %v288_v7  ;;  %p381_p0 = pnand %p380_p13, %p374_p10 }
  0x3f   :  { %295 = vmatpush3.bf16.msra.mxu1 %v294_v14 }
  0x41   :  { %271 = vmatmul.mubr.msk.f32.vlgmr.msra.gmra.mrb[0].mxu0 %vm72_vm1, %v60_v8 }
 0x114   :  { %v142_v16 = vpop.f32.mrb[0].mxu0 }
 0x115   :  { %v143_v17 = vadd.f32 %v248_v15, %v142_v16  ;;  %v272_v18 = vpop.f32.mrb[1].mxu0 }
 0x117   :  { %305 = vtanh.f32 %v143_v17 }
 0x121   :  { %v306_v19 = vpop.eup %305 }
 0x122   :  { %282 = vmatmul.mubr.msk.f32.vlgmr.msra.gmra.mrb[0].mxu1 %vm72_vm1, %v306_v19 }
 0x1f5   :  { %v227_v21 = vpop.f32.mrb[0].mxu1 }
 0x1f6   :  { %v228_v22 = vadd.f32 %v250_v20, %v227_v21  ;;  %v283_v23 = vpop.f32.mrb[1].mxu1 }
 0x1f8   :  { %231 = vst [vmem:[#allocation8] sm:$0x3] %v228_v22 }
 0x1f9   :  { %384 = shalt.err (!%p381_p0)
}
 0x1fa   :  { %s385_s11 = scalar_lea.hbm %s507_s5, 32 }
 0x1fb   :  { %p386_p1 = scmp.ne.s32.totalorder %s507_s5, %s385_s11  ;;  %p389_p2 = scmp.lt.u32.totalorder %s385_s11, %s507_s5 }
 0x1fd   :  { %p391_p3 = pnand %p389_p2, %p386_p1 }
 0x1ff   :  { %394 = shalt.err (!%p391_p3)
}
 0x200   :  { %241 = dma.vmem_to_hbm [thread:$0]  %s239_s8, 32, %s507_s5, [#allocation4]  }
 0x201   :  { %399 = dma.done.wait [#allocation4], 32  }
 0x202   :  { %400 = vsyncadd [#allocation4], 4294967264 }
 0x203   :  { %245 = vsyncpa [#allocation3], 1 }
 0x204   :  { %246 = vsyncpa [#allocation6], 1 }
 0x205   :  { %247 = vsyncpa [#allocation4], 1 }

</bundles_post_ra>
